<compile_context>
chip_gen: v7x
topology: tpu7x:2x2x1
jax: 0.10.0
libtpu: 0.0.40
codegen_flags: <defaults>
</compile_context>

<pallas_src>
import functools

import jax
import jax.numpy as jnp
from jax.experimental import pallas as pl
from jax.experimental.pallas import tpu as pltpu


_LANE = 128
_VMEM_BUDGET_BYTES = 40 * 1024 * 1024   # tile-size budget, safe on v7x (64 MiB/TC)
_VMEM_LIMIT_CAP = 48 * 1024 * 1024      # explicit scoped-VMEM request ceiling


def _max_over_width(h, W, gt):
    """Max over W groups of `gt` contiguous rows each; rows ordered (w, g).

    All slices are contiguous multiples of gt (>= 8) along the sublane axis, so
    this is a pure-VPU log2(W) tree with no relayout and no XLU reduction."""
    if W == 1:
        return h
    if W & (W - 1) == 0:                        # power-of-two W -> log2(W) tree
        rows = W * gt
        p = h
        while rows > gt:
            half = rows // 2
            p = jnp.maximum(p[:half], p[half:])
            rows = half
        return p
    p = h[:gt]                                  # general W -> linear scan
    for wi in range(1, W):
        p = jnp.maximum(p, h[wi * gt:(wi + 1) * gt])
    return p


def _cmlp2_kernel(n1, n2, W, mxu_dtype, x_ref, *refs):
    """refs = [w1_0, b1_0, v0_0, ..., w1_{n1-1}, b1_{n1-1}, v0_{n1-1},
               c2_0, v_1, c_1, ..., v_{n2-1}, c_{n2-1}, out_ref].

    w1_i / v0_i / v_j are pre-cast to mxu_dtype in the wrapper (resident in
    VMEM at that width); biases stay f32 so the bias-add / ReLU / max run on
    the f32 VPU path on every TPU generation."""
    out_ref = refs[-1]
    params = refs[:-1]

    gt = x_ref.shape[1]                         # rows per grid step along (B*H)
    c0 = x_ref.shape[2]

    # (W, gt, C0) -> (W*gt, C0): merging the leading dim into the sublane dim is
    # layout-preserving because gt is a multiple of 8 (enforced in the wrapper).
    h = x_ref[...].reshape(W * gt, c0)          # already mxu_dtype

    # ---- main MLP (1x1 conv + bias + ReLU) with the pooled-branch matmul of
    # ---- SharedMLP(args2) layer 0 interleaved, so no pooled tensor stays live.
    acc = None
    idx = 0
    for li in range(n1):
        w1 = params[idx][...]                   # (Cin, Cout)   mxu_dtype
        b1 = params[idx + 1][...]               # (1, Cout)     f32
        v0 = params[idx + 2][...]               # (Cout, C2_0)  mxu_dtype
        idx += 3
        y = jnp.dot(h, w1, preferred_element_type=jnp.float32) + b1
        hf = jnp.maximum(y, 0.0)                # f32 activations (W*gt, Cout)
        pooled = _max_over_width(hf, W, gt)     # (gt, Cout), f32
        part = jnp.dot(pooled.astype(mxu_dtype), v0,
                       preferred_element_type=jnp.float32)
        acc = part if acc is None else acc + part
        if li + 1 < n1:
            h = hf.astype(mxu_dtype)            # operand for the next layer

    # ---- SharedMLP(args2) layer 0 bias + ReLU (channel concat eliminated via
    # ---- the per-branch split of weights2[0] accumulated above).
    c_first = params[idx][...]                  # (1, C2_0), f32
    idx += 1
    z = jnp.maximum(acc + c_first, 0.0)

    # ---- SharedMLP(args2) remaining layers.
    for _ in range(1, n2):
        v = params[idx][...]
        c = params[idx + 1][...]
        idx += 2
        z = jnp.maximum(
            jnp.dot(z.astype(mxu_dtype), v,
                    preferred_element_type=jnp.float32) + c, 0.0)

    out_ref[...] = z.astype(out_ref.dtype)


def _detect_num_tensorcores():
    """Best-effort TensorCores-per-chip usable by a ('parallel',) grid axis.
    Wrong detection only changes tiling, never correctness."""
    try:
        kind = (getattr(jax.devices()[0], "device_kind", "") or "").lower()
    except Exception:
        return 1
    if "v7" in kind:
        return 2                                    # v7x: 2 TCs per chip
    if "v4" in kind:
        return 2                                    # v4/v4p megacore
    if "v5" in kind and "lite" not in kind and "5e" not in kind:
        return 2                                    # v5p megacore
    if "v6" in kind and "lite" not in kind and "6e" not in kind:
        return 2                                    # v6p-class megacore
    return 1                                        # v5e / v6e: 1 TC per chip


def _bytes_per_prepool_row(mxu_itemsize):
    """Rough per-(pre-pool)-row VMEM bytes, 128-lane padded: double-buffered
    input block + live f32 activations + mxu-dtype matmul operand + headroom
    for pooled accumulators / pipeline temporaries."""
    return (2 * _LANE * mxu_itemsize    # input block (double-buffered)
            + _LANE * 4                 # live f32 activations
            + _LANE * mxu_itemsize      # cast matmul operand
            + _LANE * 4)                # margin (acc / z / temps)


def _pick_bt(B, H, W, num_cores, target_rows, mxu_itemsize):
    """Examples per grid step.

    Priorities: legal blocks, fit the VMEM budget, large MXU M per step, one
    step per TensorCore's worth of work on megacore chips, divide B evenly."""
    rows_per_ex = H * W
    max_rows_vmem = max(rows_per_ex,
                        _VMEM_BUDGET_BYTES // _bytes_per_prepool_row(mxu_itemsize))
    bt = max(1, min(target_rows, max_rows_vmem) // rows_per_ex)
    bt = min(bt, B)
    if num_cores > 1 and B >= num_cores:
        bt = min(bt, B // num_cores)                # keep every TC busy
    bt = max(bt, 1)
    if num_cores > 1 and B % num_cores == 0:
        # Grid length must be a multiple of the core count for balanced work
        # under dimension_semantics=("parallel",).
        while bt > 1 and (B % bt != 0 or (B // bt) % num_cores != 0):
            bt -= 1
        if B % bt != 0 or (B // bt) % num_cores != 0:
            bt = 1
    else:
        # Single TC: the grid is a serial loop, so just divide B evenly with
        # the largest tile that fits the budget.
        while B % bt != 0:
            bt -= 1
    # The (gt, C) blocks need gt % 8 == 0; otherwise fall back to one
    # full-array block (always legal), trading the multi-core split for legality.
    if (bt * H) % 8 != 0 and bt != B:
        bt = B
    return bt


def cmlp2_forward(x_nchw, weights1, biases1, weights2, biases2,
                  *, mxu_dtype=jnp.bfloat16, target_rows=8192, num_cores=None):
    """CMLP2 forward (bn=False path).

    x_nchw: (B, C0, H, W); weightsK[i]: (Cin, Cout); biasesK[i]: (Cout,).
    Returns (B, Cout2, H, 1) float32, matching the PyTorch module output.

    mxu_dtype=bfloat16 is the native MXU rate on v5e/v6e/v7x; accumulation and
    all elementwise work stay f32.  Pass jnp.float32 for bit-tighter output."""
    B, C0, H, W = x_nchw.shape
    n1, n2 = len(weights1), len(weights2)
    assert n1 >= 1 and n2 >= 1
    cout2 = weights2[-1].shape[1]
    N = B * H

    if num_cores is None:
        num_cores = _detect_num_tensorcores()
    itemsize = jnp.dtype(mxu_dtype).itemsize
    bt = _pick_bt(B, H, W, num_cores, target_rows, itemsize)
    gt = bt * H
    grid = (B // bt,)

    # Explicit scoped-VMEM request: actual need (lane-padded) x2 headroom,
    # clamped so it is safe on v7x's 64 MiB physical VMEM.
    vmem_need = gt * W * _bytes_per_prepool_row(itemsize) + (2 << 20)
    vmem_limit_bytes = int(min(_VMEM_LIMIT_CAP, max(16 << 20, 2 * vmem_need)))

    # (B, C0, H, W) -> (W, B*H, C0): channels-last on lanes, width outermost so
    # the in-kernel pool is a contiguous-slice max tree.  Cast first so the
    # transpose and the kernel's input DMA both move half-width data when bf16.
    # TODO(synk): accept width-major/channels-last inputs upstream to drop this
    # extra HBM round trip of x.
    x = jnp.transpose(x_nchw.astype(mxu_dtype), (3, 0, 2, 1)).reshape(W, N, C0)

    def _const_spec(shape):
        nd = len(shape)
        return pl.BlockSpec(shape, lambda g, _nd=nd: (0,) * _nd)

    # Pre-cast weights to mxu_dtype (resident in VMEM at half width, no
    # per-step cast); biases stay f32 (added to the f32 MXU accumulator, and a
    # (1, Cout) f32 block costs one padded tile anyway).  weights2[0] is
    # pre-split per pooled branch so the kernel never concatenates along lanes.
    assert weights2[0].shape[0] == sum(w.shape[1] for w in weights1), \
        "args2[0] must equal sum(args[1:])"
    params = []
    in_specs = [pl.BlockSpec((W, gt, C0), lambda g: (0, g, 0))]
    off = 0
    for w1, b1 in zip(weights1, biases1):
        c = w1.shape[1]
        v0 = weights2[0][off:off + c]
        off += c
        for p in (w1.astype(mxu_dtype),
                  b1.reshape(1, -1).astype(jnp.float32),
                  v0.astype(mxu_dtype)):
            params.append(p)
            in_specs.append(_const_spec(p.shape))
    c2_0 = biases2[0].reshape(1, -1).astype(jnp.float32)
    params.append(c2_0)
    in_specs.append(_const_spec(c2_0.shape))
    for v, c in zip(weights2[1:], biases2[1:]):
        for p in (v.astype(mxu_dtype), c.reshape(1, -1).astype(jnp.float32)):
            params.append(p)
            in_specs.append(_const_spec(p.shape))

    # Advisory cost estimate for XLA scheduling around the custom call.
    flops = 0
    for w in weights1:
        flops += 2 * N * W * w.shape[0] * w.shape[1]
    for w in weights2:
        flops += 2 * N * w.shape[0] * w.shape[1]
    bytes_accessed = int(x.size * itemsize + N * cout2 * 4
                         + sum(int(p.size) * p.dtype.itemsize for p in params))
    cost = pl.CostEstimate(flops=int(flops), transcendentals=0,
                           bytes_accessed=bytes_accessed)

    # Output blocks: (gt, cout2) with gt % 8 == 0 (or the full array) is always
    # legal; the pooled output is W*C0/cout2 smaller than the input so the
    # store path is not the bottleneck here (see header note).
    out_shape = jax.ShapeDtypeStruct((N, cout2), jnp.float32)
    out_spec = pl.BlockSpec((gt, cout2), lambda g: (g, 0))

    out = pl.pallas_call(
        functools.partial(_cmlp2_kernel, n1, n2, W, mxu_dtype),
        out_shape=out_shape,
        grid=grid,
        in_specs=in_specs,
        out_specs=out_spec,
        compiler_params=pltpu.CompilerParams(
            dimension_semantics=("parallel",),
            vmem_limit_bytes=vmem_limit_bytes),
        cost_estimate=cost,
    )(x, *params)

    # (B*H, Cout2) -> (B, Cout2, H, 1): PyTorch NCHW output layout.
    out = out.reshape(B, H, cout2)
    return jnp.transpose(out, (0, 2, 1))[..., None]


def cmlp2_reference(x_nchw, weights1, biases1, weights2, biases2):
    """Pure-JAX f32 reference of the PyTorch forward (for correctness check)."""
    h = jnp.transpose(x_nchw, (0, 2, 3, 1))          # (B, H, W, C)
    pooled = []
    for w, b in zip(weights1, biases1):
        h = jnp.maximum(jnp.einsum("bhwc,cd->bhwd", h, w) + b, 0.0)
        pooled.append(jnp.max(h, axis=2))            # (B, H, Cout)
    z = jnp.concatenate(pooled, axis=-1)
    for w, b in zip(weights2, biases2):
        z = jnp.maximum(jnp.einsum("bhc,cd->bhd", z, w) + b, 0.0)
    return jnp.transpose(z, (0, 2, 1))[..., None]    # (B, Cout2, H, 1)


if __name__ == "__main__":
    B, C0, H, W = 2, 4, 16, 16
    args = [C0, 8, 16]                 # main MLP channel sizes
    args2 = [8 + 16, 32, 16]           # args2[0] == sum(args[1:]) (concat channels)

    key = jax.random.PRNGKey(0)
    n_keys = 1 + (len(args) - 1) + (len(args2) - 1)
    keys = jax.random.split(key, n_keys)

    x = jax.random.normal(keys[0], (B, C0, H, W), jnp.float32)

    # Deterministic kaiming-normal-like init (std = sqrt(2 / fan_in)); bias = 0
    # (matches nn.init.kaiming_normal_ + nn.init.constant_(bias, 0)).
    weights1, biases1 = [], []
    for i in range(len(args) - 1):
        cin, cout = args[i], args[i + 1]
        w = jax.random.normal(keys[1 + i], (cin, cout), jnp.float32) * jnp.sqrt(2.0 / cin)
        weights1.append(w)
        biases1.append(jnp.zeros((cout,), jnp.float32))

    weights2, biases2 = [], []
    off = len(args)
    for j in range(len(args2) - 1):
        cin, cout = args2[j], args2[j + 1]
        w = jax.random.normal(keys[off + j], (cin, cout), jnp.float32) * jnp.sqrt(2.0 / cin)
        weights2.append(w)
        biases2.append(jnp.zeros((cout,), jnp.float32))

    fwd = jax.jit(cmlp2_forward)
    out = jax.block_until_ready(fwd(x, weights1, biases1, weights2, biases2))

    ref = cmlp2_reference(x, weights1, biases1, weights2, biases2)
    assert out.shape == (B, args2[-1], H, 1), out.shape
    # Default path runs the MXU with bf16 operands (f32 accumulation), so the
    # comparison against the pure-f32 reference uses bf16-appropriate tolerance.
    assert jnp.allclose(out, ref, atol=1e-1, rtol=5e-2), "kernel/ref mismatch"
    print("KERNEL_OK")
</pallas_src>

<mosaic_0001>
module attributes {stable_mosaic.version = 11 : i64} {
  func.func @_cmlp2_kernel(%arg0: i32, %arg1: memref<16x32x4xbf16, #tpu.memory_space<vmem>>, %arg2: memref<4x8xbf16, #tpu.memory_space<vmem>>, %arg3: memref<1x8xf32, #tpu.memory_space<vmem>>, %arg4: memref<8x32xbf16, #tpu.memory_space<vmem>>, %arg5: memref<8x16xbf16, #tpu.memory_space<vmem>>, %arg6: memref<1x16xf32, #tpu.memory_space<vmem>>, %arg7: memref<16x32xbf16, #tpu.memory_space<vmem>>, %arg8: memref<1x32xf32, #tpu.memory_space<vmem>>, %arg9: memref<32x16xbf16, #tpu.memory_space<vmem>>, %arg10: memref<1x16xf32, #tpu.memory_space<vmem>>, %arg11: memref<32x16xf32, #tpu.memory_space<vmem>>) attributes {dimension_semantics = [#tpu.dimension_semantics<parallel>], iteration_bounds = array<i64: 1>, scalar_prefetch = 0 : i64, scratch_operands = 0 : i64, tpu.core_type = #tpu.core_type<tc>, window_params = [{transform_indices = @transform_0, window_bounds = array<i64: 16, 32, 4>}, {pipeline_mode = #tpu.pipeline_mode<synchronous>, transform_indices = @transform_1, window_bounds = array<i64: 4, 8>}, {pipeline_mode = #tpu.pipeline_mode<synchronous>, transform_indices = @transform_2, window_bounds = array<i64: 1, 8>}, {pipeline_mode = #tpu.pipeline_mode<synchronous>, transform_indices = @transform_3, window_bounds = array<i64: 8, 32>}, {pipeline_mode = #tpu.pipeline_mode<synchronous>, transform_indices = @transform_4, window_bounds = array<i64: 8, 16>}, {pipeline_mode = #tpu.pipeline_mode<synchronous>, transform_indices = @transform_5, window_bounds = array<i64: 1, 16>}, {pipeline_mode = #tpu.pipeline_mode<synchronous>, transform_indices = @transform_6, window_bounds = array<i64: 16, 32>}, {pipeline_mode = #tpu.pipeline_mode<synchronous>, transform_indices = @transform_7, window_bounds = array<i64: 1, 32>}, {pipeline_mode = #tpu.pipeline_mode<synchronous>, transform_indices = @transform_8, window_bounds = array<i64: 32, 16>}, {pipeline_mode = #tpu.pipeline_mode<synchronous>, transform_indices = @transform_9, window_bounds = array<i64: 1, 16>}, {transform_indices = @transform_10, window_bounds = array<i64: 32, 16>}]} {
    %c0 = arith.constant 0 : index
    %c0_0 = arith.constant 0 : index
    %c0_1 = arith.constant 0 : index
    %0 = vector.load %arg1[%c0, %c0_0, %c0_1] : memref<16x32x4xbf16, #tpu.memory_space<vmem>>, vector<16x32x4xbf16>
    %1 = vector.shape_cast %0 : vector<16x32x4xbf16> to vector<512x4xbf16>
    %c0_2 = arith.constant 0 : index
    %c0_3 = arith.constant 0 : index
    %2 = vector.load %arg2[%c0_2, %c0_3] : memref<4x8xbf16, #tpu.memory_space<vmem>>, vector<4x8xbf16>
    %c0_4 = arith.constant 0 : index
    %c0_5 = arith.constant 0 : index
    %3 = vector.load %arg3[%c0_4, %c0_5] : memref<1x8xf32, #tpu.memory_space<vmem>>, vector<1x8xf32>
    %c0_6 = arith.constant 0 : index
    %c0_7 = arith.constant 0 : index
    %4 = vector.load %arg4[%c0_6, %c0_7] : memref<8x32xbf16, #tpu.memory_space<vmem>>, vector<8x32xbf16>
    %cst = arith.constant dense<0.000000e+00> : vector<512x8xf32>
    %5 = tpu.matmul %1, %2, %cst {dimension_numbers = #tpu.dot_dimension_numbers<[1], [0], [0], [1], [0, 0, 1, 1], [], []>} : vector<512x4xbf16>, vector<4x8xbf16>, vector<512x8xf32> -> vector<512x8xf32>
    %6 = vector.broadcast %3 : vector<1x8xf32> to vector<512x8xf32>
    %7 = arith.addf %5, %6 : vector<512x8xf32>
    %cst_8 = arith.constant 0.000000e+00 : f32
    %8 = vector.broadcast %cst_8 : f32 to vector<512x8xf32>
    %9 = arith.maximumf %7, %8 : vector<512x8xf32>
    %10 = vector.extract_strided_slice %9 {offsets = [0, 0], sizes = [256, 8], strides = [1, 1]} : vector<512x8xf32> to vector<256x8xf32>
    %11 = vector.extract_strided_slice %9 {offsets = [256, 0], sizes = [256, 8], strides = [1, 1]} : vector<512x8xf32> to vector<256x8xf32>
    %12 = arith.maximumf %10, %11 : vector<256x8xf32>
    %13 = vector.extract_strided_slice %12 {offsets = [0, 0], sizes = [128, 8], strides = [1, 1]} : vector<256x8xf32> to vector<128x8xf32>
    %14 = vector.extract_strided_slice %12 {offsets = [128, 0], sizes = [128, 8], strides = [1, 1]} : vector<256x8xf32> to vector<128x8xf32>
    %15 = arith.maximumf %13, %14 : vector<128x8xf32>
    %16 = vector.extract_strided_slice %15 {offsets = [0, 0], sizes = [64, 8], strides = [1, 1]} : vector<128x8xf32> to vector<64x8xf32>
    %17 = vector.extract_strided_slice %15 {offsets = [64, 0], sizes = [64, 8], strides = [1, 1]} : vector<128x8xf32> to vector<64x8xf32>
    %18 = arith.maximumf %16, %17 : vector<64x8xf32>
    %19 = vector.extract_strided_slice %18 {offsets = [0, 0], sizes = [32, 8], strides = [1, 1]} : vector<64x8xf32> to vector<32x8xf32>
    %20 = vector.extract_strided_slice %18 {offsets = [32, 0], sizes = [32, 8], strides = [1, 1]} : vector<64x8xf32> to vector<32x8xf32>
    %21 = arith.maximumf %19, %20 : vector<32x8xf32>
    %22 = arith.truncf %21 : vector<32x8xf32> to vector<32x8xbf16>
    %cst_9 = arith.constant dense<0.000000e+00> : vector<32x32xf32>
    %23 = tpu.matmul %22, %4, %cst_9 {dimension_numbers = #tpu.dot_dimension_numbers<[1], [0], [0], [1], [0, 0, 1, 1], [], []>} : vector<32x8xbf16>, vector<8x32xbf16>, vector<32x32xf32> -> vector<32x32xf32>
    %24 = arith.truncf %9 : vector<512x8xf32> to vector<512x8xbf16>
    %c0_10 = arith.constant 0 : index
    %c0_11 = arith.constant 0 : index
    %25 = vector.load %arg5[%c0_10, %c0_11] : memref<8x16xbf16, #tpu.memory_space<vmem>>, vector<8x16xbf16>
    %c0_12 = arith.constant 0 : index
    %c0_13 = arith.constant 0 : index
    %26 = vector.load %arg6[%c0_12, %c0_13] : memref<1x16xf32, #tpu.memory_space<vmem>>, vector<1x16xf32>
    %c0_14 = arith.constant 0 : index
    %c0_15 = arith.constant 0 : index
    %27 = vector.load %arg7[%c0_14, %c0_15] : memref<16x32xbf16, #tpu.memory_space<vmem>>, vector<16x32xbf16>
    %cst_16 = arith.constant dense<0.000000e+00> : vector<512x16xf32>
    %28 = tpu.matmul %24, %25, %cst_16 {dimension_numbers = #tpu.dot_dimension_numbers<[1], [0], [0], [1], [0, 0, 1, 1], [], []>} : vector<512x8xbf16>, vector<8x16xbf16>, vector<512x16xf32> -> vector<512x16xf32>
    %29 = vector.broadcast %26 : vector<1x16xf32> to vector<512x16xf32>
    %30 = arith.addf %28, %29 : vector<512x16xf32>
    %cst_17 = arith.constant 0.000000e+00 : f32
    %31 = vector.broadcast %cst_17 : f32 to vector<512x16xf32>
    %32 = arith.maximumf %30, %31 : vector<512x16xf32>
    %33 = vector.extract_strided_slice %32 {offsets = [0, 0], sizes = [256, 16], strides = [1, 1]} : vector<512x16xf32> to vector<256x16xf32>
    %34 = vector.extract_strided_slice %32 {offsets = [256, 0], sizes = [256, 16], strides = [1, 1]} : vector<512x16xf32> to vector<256x16xf32>
    %35 = arith.maximumf %33, %34 : vector<256x16xf32>
    %36 = vector.extract_strided_slice %35 {offsets = [0, 0], sizes = [128, 16], strides = [1, 1]} : vector<256x16xf32> to vector<128x16xf32>
    %37 = vector.extract_strided_slice %35 {offsets = [128, 0], sizes = [128, 16], strides = [1, 1]} : vector<256x16xf32> to vector<128x16xf32>
    %38 = arith.maximumf %36, %37 : vector<128x16xf32>
    %39 = vector.extract_strided_slice %38 {offsets = [0, 0], sizes = [64, 16], strides = [1, 1]} : vector<128x16xf32> to vector<64x16xf32>
    %40 = vector.extract_strided_slice %38 {offsets = [64, 0], sizes = [64, 16], strides = [1, 1]} : vector<128x16xf32> to vector<64x16xf32>
    %41 = arith.maximumf %39, %40 : vector<64x16xf32>
    %42 = vector.extract_strided_slice %41 {offsets = [0, 0], sizes = [32, 16], strides = [1, 1]} : vector<64x16xf32> to vector<32x16xf32>
    %43 = vector.extract_strided_slice %41 {offsets = [32, 0], sizes = [32, 16], strides = [1, 1]} : vector<64x16xf32> to vector<32x16xf32>
    %44 = arith.maximumf %42, %43 : vector<32x16xf32>
    %45 = arith.truncf %44 : vector<32x16xf32> to vector<32x16xbf16>
    %cst_18 = arith.constant dense<0.000000e+00> : vector<32x32xf32>
    %46 = tpu.matmul %45, %27, %cst_18 {dimension_numbers = #tpu.dot_dimension_numbers<[1], [0], [0], [1], [0, 0, 1, 1], [], []>} : vector<32x16xbf16>, vector<16x32xbf16>, vector<32x32xf32> -> vector<32x32xf32>
    %47 = arith.addf %23, %46 : vector<32x32xf32>
    %c0_19 = arith.constant 0 : index
    %c0_20 = arith.constant 0 : index
    %48 = vector.load %arg8[%c0_19, %c0_20] : memref<1x32xf32, #tpu.memory_space<vmem>>, vector<1x32xf32>
    %49 = vector.broadcast %48 : vector<1x32xf32> to vector<32x32xf32>
    %50 = arith.addf %47, %49 : vector<32x32xf32>
    %cst_21 = arith.constant 0.000000e+00 : f32
    %51 = vector.broadcast %cst_21 : f32 to vector<32x32xf32>
    %52 = arith.maximumf %50, %51 : vector<32x32xf32>
    %c0_22 = arith.constant 0 : index
    %c0_23 = arith.constant 0 : index
    %53 = vector.load %arg9[%c0_22, %c0_23] : memref<32x16xbf16, #tpu.memory_space<vmem>>, vector<32x16xbf16>
    %c0_24 = arith.constant 0 : index
    %c0_25 = arith.constant 0 : index
    %54 = vector.load %arg10[%c0_24, %c0_25] : memref<1x16xf32, #tpu.memory_space<vmem>>, vector<1x16xf32>
    %55 = arith.truncf %52 : vector<32x32xf32> to vector<32x32xbf16>
    %cst_26 = arith.constant dense<0.000000e+00> : vector<32x16xf32>
    %56 = tpu.matmul %55, %53, %cst_26 {dimension_numbers = #tpu.dot_dimension_numbers<[1], [0], [0], [1], [0, 0, 1, 1], [], []>} : vector<32x32xbf16>, vector<32x16xbf16>, vector<32x16xf32> -> vector<32x16xf32>
    %57 = vector.broadcast %54 : vector<1x16xf32> to vector<32x16xf32>
    %58 = arith.addf %56, %57 : vector<32x16xf32>
    %cst_27 = arith.constant 0.000000e+00 : f32
    %59 = vector.broadcast %cst_27 : f32 to vector<32x16xf32>
    %60 = arith.maximumf %58, %59 : vector<32x16xf32>
    %c0_28 = arith.constant 0 : index
    %c0_29 = arith.constant 0 : index
    %61 = vector.load %arg11[%c0_28, %c0_29] : memref<32x16xf32, #tpu.memory_space<vmem>>, vector<32x16xf32>
    tpu.vector_store %arg11[%c0_28, %c0_29], %60 {strides = array<i32>} : memref<32x16xf32, #tpu.memory_space<vmem>>, vector<32x16xf32>,
    return
  }
  func.func @transform_0(%arg0: i32) -> (i32, i32, i32) {
    %c0_i32 = arith.constant 0 : i32
    %c0_i32_0 = arith.constant 0 : i32
    %c0_i32_1 = arith.constant 0 : i32
    return %c0_i32, %arg0, %c0_i32_0 : i32, i32, i32
  }
  func.func @transform_1(%arg0: i32) -> (i32, i32) {
    %c0_i32 = arith.constant 0 : i32
    %c0_i32_0 = arith.constant 0 : i32
    %c0_i32_1 = arith.constant 0 : i32
    return %c0_i32, %c0_i32_0 : i32, i32
  }
  func.func @transform_2(%arg0: i32) -> (i32, i32) {
    %c0_i32 = arith.constant 0 : i32
    %c0_i32_0 = arith.constant 0 : i32
    %c0_i32_1 = arith.constant 0 : i32
    return %c0_i32, %c0_i32_0 : i32, i32
  }
  func.func @transform_3(%arg0: i32) -> (i32, i32) {
    %c0_i32 = arith.constant 0 : i32
    %c0_i32_0 = arith.constant 0 : i32
    %c0_i32_1 = arith.constant 0 : i32
    return %c0_i32, %c0_i32_0 : i32, i32
  }
  func.func @transform_4(%arg0: i32) -> (i32, i32) {
    %c0_i32 = arith.constant 0 : i32
    %c0_i32_0 = arith.constant 0 : i32
    %c0_i32_1 = arith.constant 0 : i32
    return %c0_i32, %c0_i32_0 : i32, i32
  }
  func.func @transform_5(%arg0: i32) -> (i32, i32) {
    %c0_i32 = arith.constant 0 : i32
    %c0_i32_0 = arith.constant 0 : i32
    %c0_i32_1 = arith.constant 0 : i32
    return %c0_i32, %c0_i32_0 : i32, i32
  }
  func.func @transform_6(%arg0: i32) -> (i32, i32) {
    %c0_i32 = arith.constant 0 : i32
    %c0_i32_0 = arith.constant 0 : i32
    %c0_i32_1 = arith.constant 0 : i32
    return %c0_i32, %c0_i32_0 : i32, i32
  }
  func.func @transform_7(%arg0: i32) -> (i32, i32) {
    %c0_i32 = arith.constant 0 : i32
    %c0_i32_0 = arith.constant 0 : i32
    %c0_i32_1 = arith.constant 0 : i32
    return %c0_i32, %c0_i32_0 : i32, i32
  }
  func.func @transform_8(%arg0: i32) -> (i32, i32) {
    %c0_i32 = arith.constant 0 : i32
    %c0_i32_0 = arith.constant 0 : i32
    %c0_i32_1 = arith.constant 0 : i32
    return %c0_i32, %c0_i32_0 : i32, i32
  }
  func.func @transform_9(%arg0: i32) -> (i32, i32) {
    %c0_i32 = arith.constant 0 : i32
    %c0_i32_0 = arith.constant 0 : i32
    %c0_i32_1 = arith.constant 0 : i32
    return %c0_i32, %c0_i32_0 : i32, i32
  }
  func.func @transform_10(%arg0: i32) -> (i32, i32) {
    %c0_i32 = arith.constant 0 : i32
    %c0_i32_0 = arith.constant 0 : i32
    return %arg0, %c0_i32 : i32, i32
  }
}

</mosaic_0001>

<bundles_post_ra>
// kernel: cmlp2_forward.1
= control target key start
LH: loop header
LB: loop body
LE: loop exit
PB: predicated region body
PF: predicated region fallthrough
CT: control target
= control target key end

     0   :  { %vm366_vm0 = vcmask 1041408   ;;  %vm269_vm1 = vcmask 31744   ;;  %vm924_vm2 = vcmask 1043456   ;;  %vm827_vm3 = vcmask 64512   ;;  %s2373_s1 = inlined_call_operand.vmem [shape: bf16[4,8], index: 1, kind: input, shape index: {}]   ;;  %s2374_s0 = inlined_call_operand.vmem [shape: bf16[16,32,4], index: 0, kind: input, shape index: {}]   ;;  %s2375_s4 = inlined_call_operand.vmem [shape: bf16[8,16], index: 4, kind: input, shape index: {}]   ;;  %s2376_s2 = inlined_call_operand.vmem [shape: f32[1,8], index: 2, kind: input, shape index: {}]   ;;  %s2377_s6 = inlined_call_operand.vmem [shape: bf16[16,32], index: 6, kind: input, shape index: {}]   ;;  %s2378_s5 = inlined_call_operand.vmem [shape: f32[1,16], index: 5, kind: input, shape index: {}]   ;;  %s2379_s3 = inlined_call_operand.vmem [shape: bf16[8,32], index: 3, kind: input, shape index: {}]   ;;  %s2380_s8 = inlined_call_operand.vmem [shape: bf16[32,16], index: 8, kind: input, shape index: {}]   ;;  %s2381_s7 = inlined_call_operand.vmem [shape: f32[1,32], index: 7, kind: input, shape index: {}]   ;;  %s2382_s9 = inlined_call_operand.vmem [shape: f32[1,16], index: 9, kind: input, shape index: {}]   ;;  %s2383_s10 = inlined_call_operand.vmem [shape: f32[32,16], index: 10, kind: output, shape index: {}]  }
   0x1   :  { %v100_v0 = vld [vmem:[%s2373_s1] sm:$0x3]  ;;  %v1916_v3 = vld [vmem:[%s2374_s0 + $0x8] sm:$0xff]   ;;  %v1917_v4 = vld [vmem:[%s2374_s0 + $0x10] sm:$0xff]   ;;  %vm1349_vm4 = vcmask 130048   ;;  %vm1503_vm5 = vcmask 261120  }
   0x2   :  { %1912 = vmatprep.subr.msk.bf16.mxu0 %vm366_vm0, %v100_v0  ;;  %v368_v1 = vsel %vm366_vm0, %v100_v0, 0  ;;  %v1915_v2 = vld [vmem:[%s2374_s0] sm:$0xff]   ;;  %v1918_v5 = vld [vmem:[%s2374_s0 + $0x18] sm:$0xff]   ;;  %v1920_v7 = vld [vmem:[%s2374_s0 + $0x28] sm:$0xff]  }
   0x3   :  { %1757 = vmatpush3.bf16.msra.mxu0 %v368_v1  ;;  %1758 = vmatprep.mubr.msk.bf16.mxu0 %vm269_vm1, %v1915_v2  ;;  %v1919_v6 = vld [vmem:[%s2374_s0 + $0x20] sm:$0xff]   ;;  %v1921_v8 = vld [vmem:[%s2374_s0 + $0x30] sm:$0xff]   ;;  %v1922_v9 = vld [vmem:[%s2374_s0 + $0x38] sm:$0xff]  }
   0x4   :  { %v1923_v10 = vld [vmem:[%s2374_s0 + $0x40] sm:$0xff]   ;;  %v1924_v11 = vld [vmem:[%s2374_s0 + $0x48] sm:$0xff]   ;;  %v1925_v12 = vld [vmem:[%s2374_s0 + $0x50] sm:$0xff]  }
   0x5   :  { %v1926_v13 = vld [vmem:[%s2374_s0 + $0x58] sm:$0xff]   ;;  %v1927_v14 = vld [vmem:[%s2374_s0 + $0x60] sm:$0xff]   ;;  %v1928_v15 = vld [vmem:[%s2374_s0 + $0x68] sm:$0xff]  }
   0x6   :  { %1759 = vmatmul.mubr.msk.bf16.vlgmr.msra.gmra.mrb[0].mxu0 %vm269_vm1, %v1916_v3  ;;  %v1929_v16 = vld [vmem:[%s2374_s0 + $0x70] sm:$0xff]   ;;  %v1930_v17 = vld [vmem:[%s2374_s0 + $0x78] sm:$0xff]   ;;  %v1931_v18 = vld [vmem:[%s2374_s0 + $0x80] sm:$0xff]  }
   0x7   :  { %1762 = vmatprep.mubr.msk.bf16.mxu0 %vm269_vm1, %v1917_v4  ;;  %v1932_v19 = vld [vmem:[%s2374_s0 + $0x88] sm:$0xff]   ;;  %v1933_v20 = vld [vmem:[%s2374_s0 + $0x90] sm:$0xff]   ;;  %v1934_v21 = vld [vmem:[%s2374_s0 + $0x98] sm:$0xff]  }
   0x8   :  { %v1935_v22 = vld [vmem:[%s2374_s0 + $0xa0] sm:$0xff]   ;;  %v1936_v23 = vld [vmem:[%s2374_s0 + $0xa8] sm:$0xff]   ;;  %v1937_v24 = vld [vmem:[%s2374_s0 + $0xb0] sm:$0xff]  }
   0x9   :  { %v1938_v25 = vld [vmem:[%s2374_s0 + $0xb8] sm:$0xff]   ;;  %v1939_v26 = vld [vmem:[%s2374_s0 + $0xc0] sm:$0xff]   ;;  %v1940_v29 = vld [vmem:[%s2374_s0 + $0xc8] sm:$0xff]  }
   0xa   :  { %v817_v27 = vld [vmem:[%s2375_s4] sm:$0xf]  ;;  %v1941_v30 = vld [vmem:[%s2374_s0 + $0xd0] sm:$0xff]   ;;  %v1942_v31 = vld [vmem:[%s2374_s0 + $0xd8] sm:$0xff]  }
   0xb   :  { %1913 = vmatprep.subr.msk.bf16.mxu1 %vm924_vm2, %v817_v27  ;;  %v926_v28 = vsel %vm924_vm2, %v817_v27, 0  ;;  %v1943_v32 = vld [vmem:[%s2374_s0 + $0xe0] sm:$0xff]   ;;  %v1944_v33 = vld [vmem:[%s2374_s0 + $0xe8] sm:$0xff]   ;;  %v1945_v34 = vld [vmem:[%s2374_s0 + $0xf0] sm:$0xff]  }
   0xc   :  { %1823 = vmatpush3.bf16.msra.mxu1 %v926_v28  ;;  %v1946_v35 = vld [vmem:[%s2374_s0 + $0xf8] sm:$0xff]   ;;  %v2144_v36 = vld [vmem:[%s2376_s2] ss:$0 sm:$0xff] }
   0xe   :  { %1763 = vmatmul.mubr.msk.bf16.gmra.mrb[4].mxu0 %vm269_vm1, %v1918_v5 }
   0xf   :  { %1766 = vmatprep.mubr.msk.bf16.mxu0 %vm269_vm1, %v1919_v6 }
  0x16   :  { %1767 = vmatmul.mubr.msk.bf16.gmra.mrb[8].mxu0 %vm269_vm1, %v1920_v7 }
  0x17   :  { %1770 = vmatprep.mubr.msk.bf16.mxu0 %vm269_vm1, %v1921_v8 }
  0x1e   :  { %1771 = vmatmul.mubr.msk.bf16.gmra.mrb[12].mxu0 %vm269_vm1, %v1922_v9 }
  0x1f   :  { %1774 = vmatprep.mubr.msk.bf16.mxu0 %vm269_vm1, %v1923_v10 }
  0x26   :  { %1775 = vmatmul.mubr.msk.bf16.gmra.mrb[16].mxu0 %vm269_vm1, %v1924_v11 }
  0x27   :  { %1778 = vmatprep.mubr.msk.bf16.mxu0 %vm269_vm1, %v1925_v12 }
  0x2e   :  { %1779 = vmatmul.mubr.msk.bf16.gmra.mrb[20].mxu0 %vm269_vm1, %v1926_v13 }
  0x2f   :  { %1782 = vmatprep.mubr.msk.bf16.mxu0 %vm269_vm1, %v1927_v14 }
  0x36   :  { %1783 = vmatmul.mubr.msk.bf16.gmra.mrb[24].mxu0 %vm269_vm1, %v1928_v15 }
  0x37   :  { %1786 = vmatprep.mubr.msk.bf16.mxu0 %vm269_vm1, %v1929_v16 }
  0x3e   :  { %1787 = vmatmul.mubr.msk.bf16.gmra.mrb[28].mxu0 %vm269_vm1, %v1930_v17 }
  0x3f   :  { %1790 = vmatprep.mubr.msk.bf16.mxu0 %vm269_vm1, %v1931_v18 }
  0x46   :  { %1791 = vmatmul.mubr.msk.bf16.gmra.mrb[32].mxu0 %vm269_vm1, %v1932_v19 }
  0x47   :  { %1794 = vmatprep.mubr.msk.bf16.mxu0 %vm269_vm1, %v1933_v20 }
  0x4e   :  { %1795 = vmatmul.mubr.msk.bf16.gmra.mrb[36].mxu0 %vm269_vm1, %v1934_v21 }
  0x4f   :  { %1798 = vmatprep.mubr.msk.bf16.mxu0 %vm269_vm1, %v1935_v22 }
  0x56   :  { %1799 = vmatmul.mubr.msk.bf16.gmra.mrb[40].mxu0 %vm269_vm1, %v1936_v23 }
  0x57   :  { %1802 = vmatprep.mubr.msk.bf16.mxu0 %vm269_vm1, %v1937_v24 }
  0x5e   :  { %1803 = vmatmul.mubr.msk.bf16.gmra.mrb[44].mxu0 %vm269_vm1, %v1938_v25 }
  0x5f   :  { %1806 = vmatprep.mubr.msk.bf16.mxu0 %vm269_vm1, %v1939_v26 }
  0x66   :  { %1807 = vmatmul.mubr.msk.bf16.gmra.mrb[48].mxu0 %vm269_vm1, %v1940_v29 }
  0x67   :  { %1810 = vmatprep.mubr.msk.bf16.mxu0 %vm269_vm1, %v1941_v30 }
  0x6e   :  { %1811 = vmatmul.mubr.msk.bf16.gmra.mrb[52].mxu0 %vm269_vm1, %v1942_v31 }
  0x6f   :  { %1814 = vmatprep.mubr.msk.bf16.mxu0 %vm269_vm1, %v1943_v32 }
  0x76   :  { %1815 = vmatmul.mubr.msk.bf16.gmra.mrb[56].mxu0 %vm269_vm1, %v1944_v33 }
  0x77   :  { %1818 = vmatprep.mubr.msk.bf16.mxu0 %vm269_vm1, %v1945_v34 }
  0x7e   :  { %1819 = vmatmul.mubr.msk.bf16.gmra.mrb[60].mxu0 %vm269_vm1, %v1946_v35 }
  0xd9   :  { %v1760_v37 = vpop.f32.mrb[0].mxu0 }
  0xda   :  { %v413_v38 = vadd.f32 %v1760_v37, %v2144_v36  ;;  %v404_v39 = vpop.f32.mrb[1].mxu0 }
  0xdb   :  { %v405_v40 = vadd.f32 %v2144_v36, %v404_v39  ;;  %v1761_v41 = vpop.f32.mrb[2].mxu0 }
  0xdc   :  { %v416_v42 = vadd.f32 %v1761_v41, %v2144_v36  ;;  %v407_v43 = vpop.f32.mrb[3].mxu0  ;;  %v661_v45 = vmax.f32 %v413_v38, 0.0 }
  0xdd   :  { %v408_v44 = vadd.f32 %v2144_v36, %v407_v43  ;;  %v659_v47 = vmax.f32 %v405_v40, 0.0 }
  0xde   :  { %v662_v46 = vmax.f32 %v416_v42, 0.0 }
  0xdf   :  { %v660_v48 = vmax.f32 %v408_v44, 0.0 }
  0xe0   :  { %v786_v49 = vpack.c.bf16 %v662_v46, %v661_v45 }
  0xe1   :  { %v1764_v50 = vpop.f32.mrb[4].mxu0  ;;  %v785_v51 = vpack.c.bf16 %v660_v48, %v659_v47 }
  0xe2   :  { %v429_v52 = vadd.f32 %v1764_v50, %v2144_v36  ;;  %v420_v53 = vpop.f32.mrb[5].mxu0 }
  0xe3   :  { %v421_v54 = vadd.f32 %v2144_v36, %v420_v53  ;;  %v1765_v55 = vpop.f32.mrb[6].mxu0  ;;  %1824 = vmatprep.mubr.msk.bf16.mxu1 %vm827_vm3, %v785_v51 }
  0xe4   :  { %v665_v56 = vmax.f32 %v429_v52, 0.0  ;;  %v432_v57 = vadd.f32 %v1765_v55, %v2144_v36  ;;  %v423_v58 = vpop.f32.mrb[7].mxu0  ;;  %1825 = vmatmul.mubr.msk.bf16.vlgmr.msra.gmra.mrb[0].mxu1 %vm827_vm3, %v786_v49 }
  0xe5   :  { %v663_v59 = vmax.f32 %v421_v54, 0.0  ;;  %v424_v60 = vadd.f32 %v2144_v36, %v423_v58 }
  0xe6   :  { %v725_v61 = vmax.f32 %v661_v45, %v665_v56  ;;  %v666_v62 = vmax.f32 %v432_v57, 0.0 }
  0xe7   :  { %v723_v63 = vmax.f32 %v659_v47, %v663_v59  ;;  %v664_v0 = vmax.f32 %v424_v60, 0.0 }
  0xe8   :  { %v726_v1 = vmax.f32 %v662_v46, %v666_v62  ;;  %v788_v2 = vpack.c.bf16 %v666_v62, %v665_v56 }
  0xe9   :  { %v724_v3 = vmax.f32 %v660_v48, %v664_v0  ;;  %v787_v4 = vpack.c.bf16 %v664_v0, %v663_v59  ;;  %v1768_v5 = vpop.f32.mrb[8].mxu0 }
  0xea   :  { %v445_v6 = vadd.f32 %v1768_v5, %v2144_v36  ;;  %v436_v7 = vpop.f32.mrb[9].mxu0 }
  0xeb   :  { %v437_v8 = vadd.f32 %v2144_v36, %v436_v7  ;;  %v1769_v9 = vpop.f32.mrb[10].mxu0  ;;  %1828 = vmatprep.mubr.msk.bf16.mxu1 %vm827_vm3, %v787_v4 }
  0xec   :  { %v669_v10 = vmax.f32 %v445_v6, 0.0  ;;  %v448_v11 = vadd.f32 %v1769_v9, %v2144_v36  ;;  %v439_v12 = vpop.f32.mrb[11].mxu0  ;;  %1829 = vmatmul.mubr.msk.bf16.gmra.mrb[4].mxu1 %vm827_vm3, %v788_v2 }
  0xed   :  { %v667_v13 = vmax.f32 %v437_v8, 0.0  ;;  %v440_v14 = vadd.f32 %v2144_v36, %v439_v12 }
  0xee   :  { %v729_v15 = vmax.f32 %v669_v10, %v725_v61  ;;  %v670_v16 = vmax.f32 %v448_v11, 0.0 }
  0xef   :  { %v727_v17 = vmax.f32 %v667_v13, %v723_v63  ;;  %v668_v18 = vmax.f32 %v440_v14, 0.0 }
  0xf0   :  { %v730_v19 = vmax.f32 %v670_v16, %v726_v1  ;;  %v790_v20 = vpack.c.bf16 %v670_v16, %v669_v10 }
  0xf1   :  { %v728_v21 = vmax.f32 %v668_v18, %v724_v3  ;;  %v789_v22 = vpack.c.bf16 %v668_v18, %v667_v13  ;;  %v1772_v23 = vpop.f32.mrb[12].mxu0 }
  0xf2   :  { %v461_v24 = vadd.f32 %v1772_v23, %v2144_v36  ;;  %v452_v25 = vpop.f32.mrb[13].mxu0 }
  0xf3   :  { %v453_v26 = vadd.f32 %v2144_v36, %v452_v25  ;;  %v1773_v27 = vpop.f32.mrb[14].mxu0  ;;  %1832 = vmatprep.mubr.msk.bf16.mxu1 %vm827_vm3, %v789_v22 }
  0xf4   :  { %v673_v28 = vmax.f32 %v461_v24, 0.0  ;;  %v464_v29 = vadd.f32 %v1773_v27, %v2144_v36  ;;  %v455_v30 = vpop.f32.mrb[15].mxu0  ;;  %1833 = vmatmul.mubr.msk.bf16.gmra.mrb[8].mxu1 %vm827_vm3, %v790_v20 }
  0xf5   :  { %v671_v31 = vmax.f32 %v453_v26, 0.0  ;;  %v456_v32 = vadd.f32 %v2144_v36, %v455_v30 }
  0xf6   :  { %v733_v33 = vmax.f32 %v673_v28, %v729_v15  ;;  %v674_v34 = vmax.f32 %v464_v29, 0.0 }
  0xf7   :  { %v731_v35 = vmax.f32 %v671_v31, %v727_v17  ;;  %v672_v37 = vmax.f32 %v456_v32, 0.0 }
  0xf8   :  { %v734_v38 = vmax.f32 %v674_v34, %v730_v19  ;;  %v792_v39 = vpack.c.bf16 %v674_v34, %v673_v28 }
  0xf9   :  { %v732_v40 = vmax.f32 %v672_v37, %v728_v21  ;;  %v791_v41 = vpack.c.bf16 %v672_v37, %v671_v31  ;;  %v1776_v42 = vpop.f32.mrb[16].mxu0 }
  0xfa   :  { %v477_v43 = vadd.f32 %v1776_v42, %v2144_v36  ;;  %v468_v44 = vpop.f32.mrb[17].mxu0 }
  0xfb   :  { %v469_v45 = vadd.f32 %v2144_v36, %v468_v44  ;;  %v1777_v46 = vpop.f32.mrb[18].mxu0  ;;  %1836 = vmatprep.mubr.msk.bf16.mxu1 %vm827_vm3, %v791_v41 }
  0xfc   :  { %v677_v47 = vmax.f32 %v477_v43, 0.0  ;;  %v480_v48 = vadd.f32 %v1777_v46, %v2144_v36  ;;  %v471_v49 = vpop.f32.mrb[19].mxu0  ;;  %1837 = vmatmul.mubr.msk.bf16.gmra.mrb[12].mxu1 %vm827_vm3, %v792_v39 }
  0xfd   :  { %v675_v50 = vmax.f32 %v469_v45, 0.0  ;;  %v472_v51 = vadd.f32 %v2144_v36, %v471_v49 }
  0xfe   :  { %v737_v52 = vmax.f32 %v677_v47, %v733_v33  ;;  %v678_v53 = vmax.f32 %v480_v48, 0.0 }
  0xff   :  { %v735_v54 = vmax.f32 %v675_v50, %v731_v35  ;;  %v676_v55 = vmax.f32 %v472_v51, 0.0 }
 0x100   :  { %v738_v56 = vmax.f32 %v678_v53, %v734_v38  ;;  %v794_v57 = vpack.c.bf16 %v678_v53, %v677_v47 }
 0x101   :  { %v736_v58 = vmax.f32 %v676_v55, %v732_v40  ;;  %v793_v59 = vpack.c.bf16 %v676_v55, %v675_v50  ;;  %v1780_v60 = vpop.f32.mrb[20].mxu0 }
 0x102   :  { %v493_v61 = vadd.f32 %v1780_v60, %v2144_v36  ;;  %v484_v62 = vpop.f32.mrb[21].mxu0 }
 0x103   :  { %v485_v63 = vadd.f32 %v2144_v36, %v484_v62  ;;  %v1781_v0 = vpop.f32.mrb[22].mxu0  ;;  %1840 = vmatprep.mubr.msk.bf16.mxu1 %vm827_vm3, %v793_v59 }
 0x104   :  { %v681_v1 = vmax.f32 %v493_v61, 0.0  ;;  %v496_v2 = vadd.f32 %v1781_v0, %v2144_v36  ;;  %v487_v3 = vpop.f32.mrb[23].mxu0  ;;  %1841 = vmatmul.mubr.msk.bf16.gmra.mrb[16].mxu1 %vm827_vm3, %v794_v57 }
 0x105   :  { %v679_v4 = vmax.f32 %v485_v63, 0.0  ;;  %v488_v5 = vadd.f32 %v2144_v36, %v487_v3 }
 0x106   :  { %v741_v6 = vmax.f32 %v681_v1, %v737_v52  ;;  %v682_v7 = vmax.f32 %v496_v2, 0.0 }
 0x107   :  { %v739_v8 = vmax.f32 %v679_v4, %v735_v54  ;;  %v680_v9 = vmax.f32 %v488_v5, 0.0 }
 0x108   :  { %v742_v10 = vmax.f32 %v682_v7, %v738_v56  ;;  %v796_v11 = vpack.c.bf16 %v682_v7, %v681_v1 }
 0x109   :  { %v740_v12 = vmax.f32 %v680_v9, %v736_v58  ;;  %v795_v13 = vpack.c.bf16 %v680_v9, %v679_v4  ;;  %v1784_v14 = vpop.f32.mrb[24].mxu0 }
 0x10a   :  { %v509_v15 = vadd.f32 %v1784_v14, %v2144_v36  ;;  %v500_v16 = vpop.f32.mrb[25].mxu0 }
 0x10b   :  { %v501_v17 = vadd.f32 %v2144_v36, %v500_v16  ;;  %v1785_v18 = vpop.f32.mrb[26].mxu0  ;;  %1844 = vmatprep.mubr.msk.bf16.mxu1 %vm827_vm3, %v795_v13 }
 0x10c   :  { %v685_v19 = vmax.f32 %v509_v15, 0.0  ;;  %v512_v20 = vadd.f32 %v1785_v18, %v2144_v36  ;;  %v503_v21 = vpop.f32.mrb[27].mxu0  ;;  %1845 = vmatmul.mubr.msk.bf16.gmra.mrb[20].mxu1 %vm827_vm3, %v796_v11 }
 0x10d   :  { %v683_v22 = vmax.f32 %v501_v17, 0.0  ;;  %v504_v23 = vadd.f32 %v2144_v36, %v503_v21 }
 0x10e   :  { %v757_v24 = vmax.f32 %v685_v19, %v741_v6  ;;  %v686_v25 = vmax.f32 %v512_v20, 0.0 }
 0x10f   :  { %v755_v26 = vmax.f32 %v683_v22, %v739_v8  ;;  %v684_v27 = vmax.f32 %v504_v23, 0.0 }
 0x110   :  { %v758_v28 = vmax.f32 %v686_v25, %v742_v10  ;;  %v798_v29 = vpack.c.bf16 %v686_v25, %v685_v19 }
 0x111   :  { %v756_v30 = vmax.f32 %v684_v27, %v740_v12  ;;  %v797_v31 = vpack.c.bf16 %v684_v27, %v683_v22  ;;  %v1788_v32 = vpop.f32.mrb[28].mxu0 }
 0x112   :  { %v525_v33 = vadd.f32 %v1788_v32, %v2144_v36  ;;  %v516_v34 = vpop.f32.mrb[29].mxu0 }
 0x113   :  { %v517_v35 = vadd.f32 %v2144_v36, %v516_v34  ;;  %v1789_v37 = vpop.f32.mrb[30].mxu0  ;;  %1848 = vmatprep.mubr.msk.bf16.mxu1 %vm827_vm3, %v797_v31 }
 0x114   :  { %v689_v38 = vmax.f32 %v525_v33, 0.0  ;;  %v528_v39 = vadd.f32 %v1789_v37, %v2144_v36  ;;  %v519_v40 = vpop.f32.mrb[31].mxu0  ;;  %1849 = vmatmul.mubr.msk.bf16.gmra.mrb[24].mxu1 %vm827_vm3, %v798_v29 }
 0x115   :  { %v687_v41 = vmax.f32 %v517_v35, 0.0  ;;  %v520_v42 = vadd.f32 %v2144_v36, %v519_v40 }
 0x116   :  { %v745_v43 = vmax.f32 %v689_v38, %v757_v24  ;;  %v690_v44 = vmax.f32 %v528_v39, 0.0 }
 0x117   :  { %v743_v45 = vmax.f32 %v687_v41, %v755_v26  ;;  %v688_v46 = vmax.f32 %v520_v42, 0.0 }
 0x118   :  { %v746_v47 = vmax.f32 %v690_v44, %v758_v28  ;;  %v800_v48 = vpack.c.bf16 %v690_v44, %v689_v38 }
 0x119   :  { %v744_v49 = vmax.f32 %v688_v46, %v756_v30  ;;  %v799_v50 = vpack.c.bf16 %v688_v46, %v687_v41  ;;  %v1792_v51 = vpop.f32.mrb[32].mxu0 }
 0x11a   :  { %v541_v52 = vadd.f32 %v1792_v51, %v2144_v36  ;;  %v532_v53 = vpop.f32.mrb[33].mxu0 }
 0x11b   :  { %v533_v54 = vadd.f32 %v2144_v36, %v532_v53  ;;  %v1793_v55 = vpop.f32.mrb[34].mxu0  ;;  %1852 = vmatprep.mubr.msk.bf16.mxu1 %vm827_vm3, %v799_v50 }
 0x11c   :  { %v693_v56 = vmax.f32 %v541_v52, 0.0  ;;  %v544_v57 = vadd.f32 %v1793_v55, %v2144_v36  ;;  %v535_v58 = vpop.f32.mrb[35].mxu0  ;;  %1853 = vmatmul.mubr.msk.bf16.gmra.mrb[28].mxu1 %vm827_vm3, %v800_v48 }
 0x11d   :  { %v691_v59 = vmax.f32 %v533_v54, 0.0  ;;  %v536_v60 = vadd.f32 %v2144_v36, %v535_v58 }
 0x11e   :  { %v761_v61 = vmax.f32 %v693_v56, %v745_v43  ;;  %v694_v62 = vmax.f32 %v544_v57, 0.0 }
 0x11f   :  { %v759_v63 = vmax.f32 %v691_v59, %v743_v45  ;;  %v692_v0 = vmax.f32 %v536_v60, 0.0 }
 0x120   :  { %v762_v1 = vmax.f32 %v694_v62, %v746_v47  ;;  %v802_v2 = vpack.c.bf16 %v694_v62, %v693_v56 }
 0x121   :  { %v760_v3 = vmax.f32 %v692_v0, %v744_v49  ;;  %v801_v4 = vpack.c.bf16 %v692_v0, %v691_v59  ;;  %v1796_v5 = vpop.f32.mrb[36].mxu0 }
 0x122   :  { %v557_v6 = vadd.f32 %v1796_v5, %v2144_v36  ;;  %v548_v7 = vpop.f32.mrb[37].mxu0 }
 0x123   :  { %v549_v8 = vadd.f32 %v2144_v36, %v548_v7  ;;  %v1797_v9 = vpop.f32.mrb[38].mxu0  ;;  %1856 = vmatprep.mubr.msk.bf16.mxu1 %vm827_vm3, %v801_v4 }
 0x124   :  { %v697_v10 = vmax.f32 %v557_v6, 0.0  ;;  %v560_v11 = vadd.f32 %v1797_v9, %v2144_v36  ;;  %v551_v12 = vpop.f32.mrb[39].mxu0  ;;  %1857 = vmatmul.mubr.msk.bf16.gmra.mrb[32].mxu1 %vm827_vm3, %v802_v2 }
 0x125   :  { %v695_v13 = vmax.f32 %v549_v8, 0.0  ;;  %v552_v14 = vadd.f32 %v2144_v36, %v551_v12 }
 0x126   :  { %v749_v15 = vmax.f32 %v697_v10, %v761_v61  ;;  %v698_v16 = vmax.f32 %v560_v11, 0.0 }
 0x127   :  { %v747_v17 = vmax.f32 %v695_v13, %v759_v63  ;;  %v696_v18 = vmax.f32 %v552_v14, 0.0 }
 0x128   :  { %v750_v19 = vmax.f32 %v698_v16, %v762_v1  ;;  %v804_v20 = vpack.c.bf16 %v698_v16, %v697_v10 }
 0x129   :  { %v748_v21 = vmax.f32 %v696_v18, %v760_v3  ;;  %v803_v22 = vpack.c.bf16 %v696_v18, %v695_v13  ;;  %v1800_v23 = vpop.f32.mrb[40].mxu0 }
 0x12a   :  { %v573_v24 = vadd.f32 %v1800_v23, %v2144_v36  ;;  %v564_v25 = vpop.f32.mrb[41].mxu0 }
 0x12b   :  { %v565_v26 = vadd.f32 %v2144_v36, %v564_v25  ;;  %v1801_v27 = vpop.f32.mrb[42].mxu0  ;;  %1860 = vmatprep.mubr.msk.bf16.mxu1 %vm827_vm3, %v803_v22 }
 0x12c   :  { %v701_v28 = vmax.f32 %v573_v24, 0.0  ;;  %v576_v29 = vadd.f32 %v1801_v27, %v2144_v36  ;;  %v567_v30 = vpop.f32.mrb[43].mxu0  ;;  %1861 = vmatmul.mubr.msk.bf16.gmra.mrb[36].mxu1 %vm827_vm3, %v804_v20 }
 0x12d   :  { %v699_v31 = vmax.f32 %v565_v26, 0.0  ;;  %v568_v32 = vadd.f32 %v2144_v36, %v567_v30 }
 0x12e   :  { %v765_v33 = vmax.f32 %v701_v28, %v749_v15  ;;  %v702_v34 = vmax.f32 %v576_v29, 0.0 }
 0x12f   :  { %v763_v35 = vmax.f32 %v699_v31, %v747_v17  ;;  %v700_v37 = vmax.f32 %v568_v32, 0.0 }
 0x130   :  { %v766_v38 = vmax.f32 %v702_v34, %v750_v19  ;;  %v806_v39 = vpack.c.bf16 %v702_v34, %v701_v28  ;;  %v1947_v28 = vld [vmem:[%s2377_s6] sm:$0xff]  }
 0x131   :  { %v764_v40 = vmax.f32 %v700_v37, %v748_v21  ;;  %v805_v41 = vpack.c.bf16 %v700_v37, %v699_v31  ;;  %v1804_v42 = vpop.f32.mrb[44].mxu0  ;;  %1888 = vmatprep.subr.bf16.mxu0 %v1947_v28 }
 0x132   :  { %v589_v43 = vadd.f32 %v1804_v42, %v2144_v36  ;;  %v580_v44 = vpop.f32.mrb[45].mxu0  ;;  %1889 = vmatpush3.bf16.msra.mxu0 %v1947_v28 }
 0x133   :  { %v581_v45 = vadd.f32 %v2144_v36, %v580_v44  ;;  %v1805_v46 = vpop.f32.mrb[46].mxu0  ;;  %1864 = vmatprep.mubr.msk.bf16.mxu1 %vm827_vm3, %v805_v41 }
 0x134   :  { %v705_v47 = vmax.f32 %v589_v43, 0.0  ;;  %v592_v48 = vadd.f32 %v1805_v46, %v2144_v36  ;;  %v583_v49 = vpop.f32.mrb[47].mxu0  ;;  %1865 = vmatmul.mubr.msk.bf16.gmra.mrb[40].mxu1 %vm827_vm3, %v806_v39 }
 0x135   :  { %v703_v50 = vmax.f32 %v581_v45, 0.0  ;;  %v584_v51 = vadd.f32 %v2144_v36, %v583_v49 }
 0x136   :  { %v773_v52 = vmax.f32 %v705_v47, %v765_v33  ;;  %v706_v53 = vmax.f32 %v592_v48, 0.0 }
 0x137   :  { %v771_v54 = vmax.f32 %v703_v50, %v763_v35  ;;  %v704_v55 = vmax.f32 %v584_v51, 0.0 }
 0x138   :  { %v774_v56 = vmax.f32 %v706_v53, %v766_v38  ;;  %v808_v57 = vpack.c.bf16 %v706_v53, %v705_v47 }
 0x139   :  { %v772_v58 = vmax.f32 %v704_v55, %v764_v40  ;;  %v807_v59 = vpack.c.bf16 %v704_v55, %v703_v50  ;;  %v1808_v60 = vpop.f32.mrb[48].mxu0 }
 0x13a   :  { %v605_v61 = vadd.f32 %v1808_v60, %v2144_v36  ;;  %v596_v62 = vpop.f32.mrb[49].mxu0 }
 0x13b   :  { %v597_v63 = vadd.f32 %v2144_v36, %v596_v62  ;;  %v1809_v0 = vpop.f32.mrb[50].mxu0  ;;  %1868 = vmatprep.mubr.msk.bf16.mxu1 %vm827_vm3, %v807_v59 }
 0x13c   :  { %v709_v1 = vmax.f32 %v605_v61, 0.0  ;;  %v608_v2 = vadd.f32 %v1809_v0, %v2144_v36  ;;  %v599_v3 = vpop.f32.mrb[51].mxu0  ;;  %1869 = vmatmul.mubr.msk.bf16.gmra.mrb[44].mxu1 %vm827_vm3, %v808_v57 }
 0x13d   :  { %v707_v4 = vmax.f32 %v597_v63, 0.0  ;;  %v600_v5 = vadd.f32 %v2144_v36, %v599_v3 }
 0x13e   :  { %v753_v6 = vmax.f32 %v709_v1, %v773_v52  ;;  %v710_v7 = vmax.f32 %v608_v2, 0.0 }
 0x13f   :  { %v751_v8 = vmax.f32 %v707_v4, %v771_v54  ;;  %v708_v9 = vmax.f32 %v600_v5, 0.0 }
 0x140   :  { %v754_v10 = vmax.f32 %v710_v7, %v774_v56  ;;  %v810_v11 = vpack.c.bf16 %v710_v7, %v709_v1 }
 0x141   :  { %v752_v12 = vmax.f32 %v708_v9, %v772_v58  ;;  %v809_v13 = vpack.c.bf16 %v708_v9, %v707_v4  ;;  %v1812_v14 = vpop.f32.mrb[52].mxu0 }
 0x142   :  { %v621_v15 = vadd.f32 %v1812_v14, %v2144_v36  ;;  %v612_v16 = vpop.f32.mrb[53].mxu0 }
 0x143   :  { %v613_v17 = vadd.f32 %v2144_v36, %v612_v16  ;;  %v1813_v18 = vpop.f32.mrb[54].mxu0  ;;  %1872 = vmatprep.mubr.msk.bf16.mxu1 %vm827_vm3, %v809_v13 }
 0x144   :  { %v713_v19 = vmax.f32 %v621_v15, 0.0  ;;  %v624_v20 = vadd.f32 %v1813_v18, %v2144_v36  ;;  %v615_v21 = vpop.f32.mrb[55].mxu0  ;;  %1873 = vmatmul.mubr.msk.bf16.gmra.mrb[48].mxu1 %vm827_vm3, %v810_v11  ;;  %v2260_v11 = vld [vmem:[%s2378_s5] ss:$0 sm:$0xff] }
 0x145   :  { %v711_v22 = vmax.f32 %v613_v17, 0.0  ;;  %v616_v23 = vadd.f32 %v2144_v36, %v615_v21 }
 0x146   :  { %v769_v24 = vmax.f32 %v713_v19, %v753_v6  ;;  %v714_v25 = vmax.f32 %v624_v20, 0.0 }
 0x147   :  { %v767_v26 = vmax.f32 %v711_v22, %v751_v8  ;;  %v712_v27 = vmax.f32 %v616_v23, 0.0 }
 0x148   :  { %v770_v29 = vmax.f32 %v714_v25, %v754_v10  ;;  %v812_v30 = vpack.c.bf16 %v714_v25, %v713_v19 }
 0x149   :  { %v768_v31 = vmax.f32 %v712_v27, %v752_v12  ;;  %v811_v32 = vpack.c.bf16 %v712_v27, %v711_v22  ;;  %v1816_v33 = vpop.f32.mrb[56].mxu0  ;;  %v2265_v12 = vld [vmem:[%s2379_s3] sm:$0xf] }
 0x14a   :  { %v637_v34 = vadd.f32 %v1816_v33, %v2144_v36  ;;  %v628_v35 = vpop.f32.mrb[57].mxu0  ;;  %1914 = vmatprep.subr.msk.bf16.mxu0 %vm924_vm2, %v2265_v12 }
 0x14b   :  { %v629_v37 = vadd.f32 %v2144_v36, %v628_v35  ;;  %v1817_v38 = vpop.f32.mrb[58].mxu0  ;;  %1876 = vmatprep.mubr.msk.bf16.mxu1 %vm827_vm3, %v811_v32 }
 0x14c   :  { %v717_v39 = vmax.f32 %v637_v34, 0.0  ;;  %v640_v40 = vadd.f32 %v1817_v38, %v2144_v36  ;;  %v631_v41 = vpop.f32.mrb[59].mxu0  ;;  %1877 = vmatmul.mubr.msk.bf16.gmra.mrb[52].mxu1 %vm827_vm3, %v812_v30 }
 0x14d   :  { %v715_v42 = vmax.f32 %v629_v37, 0.0  ;;  %v632_v43 = vadd.f32 %v2144_v36, %v631_v41 }
 0x14e   :  { %v777_v44 = vmax.f32 %v717_v39, %v769_v24  ;;  %v718_v45 = vmax.f32 %v640_v40, 0.0 }
 0x14f   :  { %v775_v46 = vmax.f32 %v715_v42, %v767_v26  ;;  %v716_v47 = vmax.f32 %v632_v43, 0.0  ;;  %v1948_v43 = vld [vmem:[%s2380_s8] sm:$0xff]  }
 0x150   :  { %v778_v48 = vmax.f32 %v718_v45, %v770_v29  ;;  %v814_v49 = vpack.c.bf16 %v718_v45, %v717_v39  ;;  %1900 = vmatprep.subr.bf16.mxu1 %v1948_v43 }
 0x151   :  { %v776_v50 = vmax.f32 %v716_v47, %v768_v31  ;;  %v813_v51 = vpack.c.bf16 %v716_v47, %v715_v42  ;;  %v1820_v52 = vpop.f32.mrb[60].mxu0  ;;  %1901 = vmatpush3.bf16.msra.mxu1 %v1948_v43 }
 0x152   :  { %v653_v53 = vadd.f32 %v1820_v52, %v2144_v36  ;;  %v644_v54 = vpop.f32.mrb[61].mxu0 }
 0x153   :  { %v645_v55 = vadd.f32 %v2144_v36, %v644_v54  ;;  %v1821_v56 = vpop.f32.mrb[62].mxu0  ;;  %1880 = vmatprep.mubr.msk.bf16.mxu1 %vm827_vm3, %v813_v51 }
 0x154   :  { %v721_v57 = vmax.f32 %v653_v53, 0.0  ;;  %v656_v58 = vadd.f32 %v1821_v56, %v2144_v36  ;;  %v647_v59 = vpop.f32.mrb[63].mxu0  ;;  %1881 = vmatmul.mubr.msk.bf16.gmra.mrb[56].mxu1 %vm827_vm3, %v814_v49  ;;  %v1949_v49 = vld [vmem:[%s2380_s8 + $0x8] sm:$0xff]  }
 0x155   :  { %v719_v60 = vmax.f32 %v645_v55, 0.0  ;;  %v648_v61 = vadd.f32 %v2144_v36, %v647_v59  ;;  %1902 = vmatprep.subr.bf16.mxu1 %v1949_v49 }
 0x156   :  { %v2243_v62 = vmax.f32 %v721_v57, %v777_v44  ;;  %v722_v63 = vmax.f32 %v656_v58, 0.0  ;;  %1903 = vmatpush3.bf16.msra.mxu1 %v1949_v49 }
 0x157   :  { %v2245_v0 = vmax.f32 %v719_v60, %v775_v46  ;;  %v720_v1 = vmax.f32 %v648_v61, 0.0 }
 0x158   :  { %v2247_v2 = vmax.f32 %v722_v63, %v778_v48  ;;  %v816_v3 = vpack.c.bf16 %v722_v63, %v721_v57 }
 0x159   :  { %v2249_v4 = vmax.f32 %v720_v1, %v776_v50  ;;  %v815_v5 = vpack.c.bf16 %v720_v1, %v719_v60 }
 0x15a   :  { %v784_v6 = vpack.c.bf16 %v2247_v2, %v2243_v62  ;;  %v1675_v2 = vld [vmem:[%s2382_s9] ss:$0 sm:$0xff] }
 0x15b   :  { %1884 = vmatprep.mubr.msk.bf16.mxu1 %vm827_vm3, %v815_v5  ;;  %v783_v36 = vpack.c.bf16 %v2249_v4, %v2245_v0 }
 0x15c   :  { %1885 = vmatmul.mubr.msk.bf16.gmra.mrb[60].mxu1 %vm827_vm3, %v816_v3 }
 0x1b7   :  { %v1826_v7 = vpop.f32.mrb[0].mxu1 }
 0x1b8   :  { %v962_v8 = vpop.f32.mrb[1].mxu1  ;;  %v971_v13 = vadd.f32 %v1826_v7, %v2260_v11 }
 0x1b9   :  { %v1827_v9 = vpop.f32.mrb[2].mxu1  ;;  %v963_v14 = vadd.f32 %v2260_v11, %v962_v8 }
 0x1ba   :  { %v965_v10 = vpop.f32.mrb[3].mxu1  ;;  %v974_v16 = vadd.f32 %v1827_v9, %v2260_v11  ;;  %v1219_v22 = vmax.f32 %v971_v13, 0.0 }
 0x1bb   :  { %v966_v19 = vadd.f32 %v2260_v11, %v965_v10  ;;  %v1217_v26 = vmax.f32 %v963_v14, 0.0 }
 0x1bc   :  { %v1220_v29 = vmax.f32 %v974_v16, 0.0 }
 0x1bd   :  { %v1218_v32 = vmax.f32 %v966_v19, 0.0 }
 0x1bf   :  { %v1830_v15 = vpop.f32.mrb[4].mxu1 }
 0x1c0   :  { %v987_v17 = vadd.f32 %v1830_v15, %v2260_v11  ;;  %v978_v18 = vpop.f32.mrb[5].mxu1 }
 0x1c1   :  { %v979_v20 = vadd.f32 %v2260_v11, %v978_v18  ;;  %v1831_v21 = vpop.f32.mrb[6].mxu1 }
 0x1c2   :  { %v1223_v23 = vmax.f32 %v987_v17, 0.0  ;;  %v990_v24 = vadd.f32 %v1831_v21, %v2260_v11  ;;  %v981_v25 = vpop.f32.mrb[7].mxu1 }
 0x1c3   :  { %v1221_v27 = vmax.f32 %v979_v20, 0.0  ;;  %v982_v28 = vadd.f32 %v2260_v11, %v981_v25 }
 0x1c4   :  { %v1283_v30 = vmax.f32 %v1219_v22, %v1223_v23  ;;  %v1224_v31 = vmax.f32 %v990_v24, 0.0 }
 0x1c5   :  { %v1281_v33 = vmax.f32 %v1217_v26, %v1221_v27  ;;  %v1222_v34 = vmax.f32 %v982_v28, 0.0 }
 0x1c6   :  { %v1284_v35 = vmax.f32 %v1220_v29, %v1224_v31 }
 0x1c7   :  { %v1282_v37 = vmax.f32 %v1218_v32, %v1222_v34  ;;  %v1834_v38 = vpop.f32.mrb[8].mxu1 }
 0x1c8   :  { %v1003_v39 = vadd.f32 %v1834_v38, %v2260_v11  ;;  %v994_v40 = vpop.f32.mrb[9].mxu1 }
 0x1c9   :  { %v995_v41 = vadd.f32 %v2260_v11, %v994_v40  ;;  %v1835_v42 = vpop.f32.mrb[10].mxu1 }
 0x1ca   :  { %v1227_v44 = vmax.f32 %v1003_v39, 0.0  ;;  %v1006_v45 = vadd.f32 %v1835_v42, %v2260_v11  ;;  %v997_v46 = vpop.f32.mrb[11].mxu1 }
 0x1cb   :  { %v1225_v47 = vmax.f32 %v995_v41, 0.0  ;;  %v998_v48 = vadd.f32 %v2260_v11, %v997_v46 }
 0x1cc   :  { %v1287_v50 = vmax.f32 %v1227_v44, %v1283_v30  ;;  %v1228_v51 = vmax.f32 %v1006_v45, 0.0 }
 0x1cd   :  { %v1285_v52 = vmax.f32 %v1225_v47, %v1281_v33  ;;  %v1226_v53 = vmax.f32 %v998_v48, 0.0 }
 0x1ce   :  { %v1288_v54 = vmax.f32 %v1228_v51, %v1284_v35 }
 0x1cf   :  { %v1286_v55 = vmax.f32 %v1226_v53, %v1282_v37  ;;  %v1838_v56 = vpop.f32.mrb[12].mxu1 }
 0x1d0   :  { %v1019_v57 = vadd.f32 %v1838_v56, %v2260_v11  ;;  %v1010_v58 = vpop.f32.mrb[13].mxu1 }
 0x1d1   :  { %v1011_v59 = vadd.f32 %v2260_v11, %v1010_v58  ;;  %v1839_v60 = vpop.f32.mrb[14].mxu1 }
 0x1d2   :  { %v1231_v61 = vmax.f32 %v1019_v57, 0.0  ;;  %v1022_v63 = vadd.f32 %v1839_v60, %v2260_v11  ;;  %v1013_v1 = vpop.f32.mrb[15].mxu1 }
 0x1d3   :  { %v1229_v3 = vmax.f32 %v1011_v59, 0.0  ;;  %v1014_v5 = vadd.f32 %v2260_v11, %v1013_v1 }
 0x1d4   :  { %v1291_v7 = vmax.f32 %v1231_v61, %v1287_v50  ;;  %v1232_v8 = vmax.f32 %v1022_v63, 0.0 }
 0x1d5   :  { %v1289_v9 = vmax.f32 %v1229_v3, %v1285_v52  ;;  %v1230_v10 = vmax.f32 %v1014_v5, 0.0 }
 0x1d6   :  { %v1292_v13 = vmax.f32 %v1232_v8, %v1288_v54 }
 0x1d7   :  { %v1290_v14 = vmax.f32 %v1230_v10, %v1286_v55  ;;  %v1842_v15 = vpop.f32.mrb[16].mxu1 }
 0x1d8   :  { %v1035_v16 = vadd.f32 %v1842_v15, %v2260_v11  ;;  %v1026_v17 = vpop.f32.mrb[17].mxu1 }
 0x1d9   :  { %v1027_v18 = vadd.f32 %v2260_v11, %v1026_v17  ;;  %v1843_v19 = vpop.f32.mrb[18].mxu1 }
 0x1da   :  { %v1235_v20 = vmax.f32 %v1035_v16, 0.0  ;;  %v1038_v21 = vadd.f32 %v1843_v19, %v2260_v11  ;;  %v1029_v22 = vpop.f32.mrb[19].mxu1 }
 0x1db   :  { %v1233_v23 = vmax.f32 %v1027_v18, 0.0  ;;  %v1030_v24 = vadd.f32 %v2260_v11, %v1029_v22 }
 0x1dc   :  { %v1295_v25 = vmax.f32 %v1235_v20, %v1291_v7  ;;  %v1236_v26 = vmax.f32 %v1038_v21, 0.0 }
 0x1dd   :  { %v1293_v27 = vmax.f32 %v1233_v23, %v1289_v9  ;;  %v1234_v28 = vmax.f32 %v1030_v24, 0.0 }
 0x1de   :  { %v1296_v29 = vmax.f32 %v1236_v26, %v1292_v13 }
 0x1df   :  { %v1294_v30 = vmax.f32 %v1234_v28, %v1290_v14  ;;  %v1846_v31 = vpop.f32.mrb[20].mxu1 }
 0x1e0   :  { %v1051_v32 = vadd.f32 %v1846_v31, %v2260_v11  ;;  %v1042_v33 = vpop.f32.mrb[21].mxu1 }
 0x1e1   :  { %v1043_v34 = vadd.f32 %v2260_v11, %v1042_v33  ;;  %v1847_v35 = vpop.f32.mrb[22].mxu1 }
 0x1e2   :  { %v1239_v37 = vmax.f32 %v1051_v32, 0.0  ;;  %v1054_v38 = vadd.f32 %v1847_v35, %v2260_v11  ;;  %v1045_v39 = vpop.f32.mrb[23].mxu1 }
 0x1e3   :  { %v1237_v40 = vmax.f32 %v1043_v34, 0.0  ;;  %v1046_v41 = vadd.f32 %v2260_v11, %v1045_v39 }
 0x1e4   :  { %v1299_v42 = vmax.f32 %v1239_v37, %v1295_v25  ;;  %v1240_v43 = vmax.f32 %v1054_v38, 0.0 }
 0x1e5   :  { %v1297_v44 = vmax.f32 %v1237_v40, %v1293_v27  ;;  %v1238_v45 = vmax.f32 %v1046_v41, 0.0 }
 0x1e6   :  { %v1300_v46 = vmax.f32 %v1240_v43, %v1296_v29 }
 0x1e7   :  { %v1298_v47 = vmax.f32 %v1238_v45, %v1294_v30  ;;  %v1850_v48 = vpop.f32.mrb[24].mxu1 }
 0x1e8   :  { %v1067_v49 = vadd.f32 %v1850_v48, %v2260_v11  ;;  %v1058_v50 = vpop.f32.mrb[25].mxu1 }
 0x1e9   :  { %v1059_v51 = vadd.f32 %v2260_v11, %v1058_v50  ;;  %v1851_v52 = vpop.f32.mrb[26].mxu1 }
 0x1ea   :  { %v1243_v53 = vmax.f32 %v1067_v49, 0.0  ;;  %v1070_v54 = vadd.f32 %v1851_v52, %v2260_v11  ;;  %v1061_v55 = vpop.f32.mrb[27].mxu1 }
 0x1eb   :  { %v1241_v56 = vmax.f32 %v1059_v51, 0.0  ;;  %v1062_v57 = vadd.f32 %v2260_v11, %v1061_v55 }
 0x1ec   :  { %v1315_v58 = vmax.f32 %v1243_v53, %v1299_v42  ;;  %v1244_v59 = vmax.f32 %v1070_v54, 0.0 }
 0x1ed   :  { %v1313_v60 = vmax.f32 %v1241_v56, %v1297_v44  ;;  %v1242_v61 = vmax.f32 %v1062_v57, 0.0 }
 0x1ee   :  { %v1316_v63 = vmax.f32 %v1244_v59, %v1300_v46 }
 0x1ef   :  { %v1314_v1 = vmax.f32 %v1242_v61, %v1298_v47  ;;  %v1854_v3 = vpop.f32.mrb[28].mxu1 }
 0x1f0   :  { %v1083_v5 = vadd.f32 %v1854_v3, %v2260_v11  ;;  %v1074_v7 = vpop.f32.mrb[29].mxu1 }
 0x1f1   :  { %v1075_v8 = vadd.f32 %v2260_v11, %v1074_v7  ;;  %v1855_v9 = vpop.f32.mrb[30].mxu1 }
 0x1f2   :  { %v1247_v10 = vmax.f32 %v1083_v5, 0.0  ;;  %v1086_v13 = vadd.f32 %v1855_v9, %v2260_v11  ;;  %v1077_v14 = vpop.f32.mrb[31].mxu1 }
 0x1f3   :  { %v1245_v15 = vmax.f32 %v1075_v8, 0.0  ;;  %v1078_v16 = vadd.f32 %v2260_v11, %v1077_v14 }
 0x1f4   :  { %v1303_v17 = vmax.f32 %v1247_v10, %v1315_v58  ;;  %v1248_v18 = vmax.f32 %v1086_v13, 0.0 }
 0x1f5   :  { %v1301_v19 = vmax.f32 %v1245_v15, %v1313_v60  ;;  %v1246_v20 = vmax.f32 %v1078_v16, 0.0 }
 0x1f6   :  { %v1304_v21 = vmax.f32 %v1248_v18, %v1316_v63 }
 0x1f7   :  { %v1302_v22 = vmax.f32 %v1246_v20, %v1314_v1  ;;  %v1858_v23 = vpop.f32.mrb[32].mxu1 }
 0x1f8   :  { %v1099_v24 = vadd.f32 %v1858_v23, %v2260_v11  ;;  %v1090_v25 = vpop.f32.mrb[33].mxu1 }
 0x1f9   :  { %v1091_v26 = vadd.f32 %v2260_v11, %v1090_v25  ;;  %v1859_v27 = vpop.f32.mrb[34].mxu1 }
 0x1fa   :  { %v1251_v28 = vmax.f32 %v1099_v24, 0.0  ;;  %v1102_v29 = vadd.f32 %v1859_v27, %v2260_v11  ;;  %v1093_v30 = vpop.f32.mrb[35].mxu1 }
 0x1fb   :  { %v1249_v31 = vmax.f32 %v1091_v26, 0.0  ;;  %v1094_v32 = vadd.f32 %v2260_v11, %v1093_v30 }
 0x1fc   :  { %v1319_v33 = vmax.f32 %v1251_v28, %v1303_v17  ;;  %v1252_v34 = vmax.f32 %v1102_v29, 0.0 }
 0x1fd   :  { %v1317_v35 = vmax.f32 %v1249_v31, %v1301_v19  ;;  %v1250_v37 = vmax.f32 %v1094_v32, 0.0 }
 0x1fe   :  { %v1320_v38 = vmax.f32 %v1252_v34, %v1304_v21 }
 0x1ff   :  { %v1318_v39 = vmax.f32 %v1250_v37, %v1302_v22  ;;  %v1862_v40 = vpop.f32.mrb[36].mxu1 }
 0x200   :  { %v1115_v41 = vadd.f32 %v1862_v40, %v2260_v11  ;;  %v1106_v42 = vpop.f32.mrb[37].mxu1 }
 0x201   :  { %v1107_v43 = vadd.f32 %v2260_v11, %v1106_v42  ;;  %v1863_v44 = vpop.f32.mrb[38].mxu1 }
 0x202   :  { %v1255_v45 = vmax.f32 %v1115_v41, 0.0  ;;  %v1118_v46 = vadd.f32 %v1863_v44, %v2260_v11  ;;  %v1109_v47 = vpop.f32.mrb[39].mxu1 }
 0x203   :  { %v1253_v48 = vmax.f32 %v1107_v43, 0.0  ;;  %v1110_v49 = vadd.f32 %v2260_v11, %v1109_v47 }
 0x204   :  { %v1307_v50 = vmax.f32 %v1255_v45, %v1319_v33  ;;  %v1256_v51 = vmax.f32 %v1118_v46, 0.0 }
 0x205   :  { %v1305_v52 = vmax.f32 %v1253_v48, %v1317_v35  ;;  %v1254_v53 = vmax.f32 %v1110_v49, 0.0 }
 0x206   :  { %v1308_v54 = vmax.f32 %v1256_v51, %v1320_v38 }
 0x207   :  { %v1306_v55 = vmax.f32 %v1254_v53, %v1318_v39  ;;  %v1866_v56 = vpop.f32.mrb[40].mxu1 }
 0x208   :  { %v1131_v57 = vadd.f32 %v1866_v56, %v2260_v11  ;;  %v1122_v58 = vpop.f32.mrb[41].mxu1 }
 0x209   :  { %v1123_v59 = vadd.f32 %v2260_v11, %v1122_v58  ;;  %v1867_v60 = vpop.f32.mrb[42].mxu1 }
 0x20a   :  { %v1259_v61 = vmax.f32 %v1131_v57, 0.0  ;;  %v1134_v63 = vadd.f32 %v1867_v60, %v2260_v11  ;;  %v1125_v1 = vpop.f32.mrb[43].mxu1 }
 0x20b   :  { %v1257_v3 = vmax.f32 %v1123_v59, 0.0  ;;  %v1126_v5 = vadd.f32 %v2260_v11, %v1125_v1 }
 0x20c   :  { %v1323_v7 = vmax.f32 %v1259_v61, %v1307_v50  ;;  %v1260_v8 = vmax.f32 %v1134_v63, 0.0 }
 0x20d   :  { %v1321_v9 = vmax.f32 %v1257_v3, %v1305_v52  ;;  %v1258_v10 = vmax.f32 %v1126_v5, 0.0 }
 0x20e   :  { %v1324_v13 = vmax.f32 %v1260_v8, %v1308_v54 }
 0x20f   :  { %v1322_v14 = vmax.f32 %v1258_v10, %v1306_v55  ;;  %v1870_v15 = vpop.f32.mrb[44].mxu1 }
 0x210   :  { %v1147_v16 = vadd.f32 %v1870_v15, %v2260_v11  ;;  %v1138_v17 = vpop.f32.mrb[45].mxu1 }
 0x211   :  { %v1139_v18 = vadd.f32 %v2260_v11, %v1138_v17  ;;  %v1871_v19 = vpop.f32.mrb[46].mxu1 }
 0x212   :  { %v1263_v20 = vmax.f32 %v1147_v16, 0.0  ;;  %v1150_v21 = vadd.f32 %v1871_v19, %v2260_v11  ;;  %v1141_v22 = vpop.f32.mrb[47].mxu1 }
 0x213   :  { %v1261_v23 = vmax.f32 %v1139_v18, 0.0  ;;  %v1142_v24 = vadd.f32 %v2260_v11, %v1141_v22 }
 0x214   :  { %v1331_v25 = vmax.f32 %v1263_v20, %v1323_v7  ;;  %v1264_v26 = vmax.f32 %v1150_v21, 0.0 }
 0x215   :  { %v1329_v27 = vmax.f32 %v1261_v23, %v1321_v9  ;;  %v1262_v28 = vmax.f32 %v1142_v24, 0.0 }
 0x216   :  { %v1332_v29 = vmax.f32 %v1264_v26, %v1324_v13 }
 0x217   :  { %v1330_v30 = vmax.f32 %v1262_v28, %v1322_v14  ;;  %v1874_v31 = vpop.f32.mrb[48].mxu1 }
 0x218   :  { %v1163_v32 = vadd.f32 %v1874_v31, %v2260_v11  ;;  %v1154_v33 = vpop.f32.mrb[49].mxu1 }
 0x219   :  { %v1155_v34 = vadd.f32 %v2260_v11, %v1154_v33  ;;  %v1875_v35 = vpop.f32.mrb[50].mxu1 }
 0x21a   :  { %v1267_v37 = vmax.f32 %v1163_v32, 0.0  ;;  %v1166_v38 = vadd.f32 %v1875_v35, %v2260_v11  ;;  %v1157_v39 = vpop.f32.mrb[51].mxu1 }
 0x21b   :  { %v1265_v40 = vmax.f32 %v1155_v34, 0.0  ;;  %v1158_v41 = vadd.f32 %v2260_v11, %v1157_v39 }
 0x21c   :  { %v1311_v42 = vmax.f32 %v1267_v37, %v1331_v25  ;;  %v1268_v43 = vmax.f32 %v1166_v38, 0.0 }
 0x21d   :  { %v1309_v44 = vmax.f32 %v1265_v40, %v1329_v27  ;;  %v1266_v45 = vmax.f32 %v1158_v41, 0.0 }
 0x21e   :  { %v1312_v46 = vmax.f32 %v1268_v43, %v1332_v29 }
 0x21f   :  { %v1310_v47 = vmax.f32 %v1266_v45, %v1330_v30  ;;  %v1878_v48 = vpop.f32.mrb[52].mxu1 }
 0x220   :  { %v1179_v49 = vadd.f32 %v1878_v48, %v2260_v11  ;;  %v1170_v50 = vpop.f32.mrb[53].mxu1 }
 0x221   :  { %v1171_v51 = vadd.f32 %v2260_v11, %v1170_v50  ;;  %v1879_v52 = vpop.f32.mrb[54].mxu1 }
 0x222   :  { %v1271_v53 = vmax.f32 %v1179_v49, 0.0  ;;  %v1182_v54 = vadd.f32 %v1879_v52, %v2260_v11  ;;  %v1173_v55 = vpop.f32.mrb[55].mxu1 }
 0x223   :  { %v1269_v56 = vmax.f32 %v1171_v51, 0.0  ;;  %v1174_v57 = vadd.f32 %v2260_v11, %v1173_v55 }
 0x224   :  { %v1327_v58 = vmax.f32 %v1271_v53, %v1311_v42  ;;  %v1272_v59 = vmax.f32 %v1182_v54, 0.0  ;;  %v1412_v42 = vsel %vm924_vm2, %v2265_v12, 0 }
 0x225   :  { %v1325_v60 = vmax.f32 %v1269_v56, %v1309_v44  ;;  %v1270_v61 = vmax.f32 %v1174_v57, 0.0 }
 0x226   :  { %v1328_v63 = vmax.f32 %v1272_v59, %v1312_v46 }
 0x227   :  { %v1326_v1 = vmax.f32 %v1270_v61, %v1310_v47  ;;  %v1882_v3 = vpop.f32.mrb[56].mxu1 }
 0x228   :  { %v1195_v5 = vadd.f32 %v1882_v3, %v2260_v11  ;;  %v1186_v7 = vpop.f32.mrb[57].mxu1 }
 0x229   :  { %v1187_v8 = vadd.f32 %v2260_v11, %v1186_v7  ;;  %v1883_v9 = vpop.f32.mrb[58].mxu1 }
 0x22a   :  { %v1275_v10 = vmax.f32 %v1195_v5, 0.0  ;;  %v1198_v13 = vadd.f32 %v1883_v9, %v2260_v11  ;;  %v1189_v14 = vpop.f32.mrb[59].mxu1 }
 0x22b   :  { %v1273_v15 = vmax.f32 %v1187_v8, 0.0  ;;  %v1190_v16 = vadd.f32 %v2260_v11, %v1189_v14 }
 0x22c   :  { %v1335_v17 = vmax.f32 %v1275_v10, %v1327_v58  ;;  %v1276_v18 = vmax.f32 %v1198_v13, 0.0 }
 0x22d   :  { %v1333_v19 = vmax.f32 %v1273_v15, %v1325_v60  ;;  %v1274_v20 = vmax.f32 %v1190_v16, 0.0 }
 0x22e   :  { %v1336_v21 = vmax.f32 %v1276_v18, %v1328_v63 }
 0x22f   :  { %v1334_v22 = vmax.f32 %v1274_v20, %v1326_v1  ;;  %v1886_v23 = vpop.f32.mrb[60].mxu1 }
 0x230   :  { %v1211_v24 = vadd.f32 %v1886_v23, %v2260_v11  ;;  %v1202_v25 = vpop.f32.mrb[61].mxu1 }
 0x231   :  { %v1203_v26 = vadd.f32 %v2260_v11, %v1202_v25  ;;  %v1887_v27 = vpop.f32.mrb[62].mxu1 }
 0x232   :  { %v1279_v28 = vmax.f32 %v1211_v24, 0.0  ;;  %v1214_v29 = vadd.f32 %v1887_v27, %v2260_v11  ;;  %v1205_v30 = vpop.f32.mrb[63].mxu1 }
 0x233   :  { %v1277_v31 = vmax.f32 %v1203_v26, 0.0  ;;  %v1206_v32 = vadd.f32 %v2260_v11, %v1205_v30  ;;  %v1674_v11 = vld [vmem:[%s2381_s7] ss:$0 sm:$0xff] }
 0x234   :  { %v1339_v33 = vmax.f32 %v1279_v28, %v1335_v17  ;;  %v1280_v34 = vmax.f32 %v1214_v29, 0.0 }
 0x235   :  { %v1337_v35 = vmax.f32 %v1277_v31, %v1333_v19  ;;  %v1278_v37 = vmax.f32 %v1206_v32, 0.0 }
 0x236   :  { %v1340_v38 = vmax.f32 %v1280_v34, %v1336_v21 }
 0x237   :  { %v1338_v39 = vmax.f32 %v1278_v37, %v1334_v22 }
 0x238   :  { %v1342_v40 = vpack.c.bf16 %v1340_v38, %v1339_v33 }
 0x239   :  { %v1341_v41 = vpack.c.bf16 %v1338_v39, %v1337_v35 }
 0x23b   :  { %1890 = vmatprep.mubr.msk.bf16.mxu0 %vm1349_vm4, %v1341_v41 }
 0x23c   :  { %1891 = vmatmul.mubr.msk.bf16.vlgmr.msra.gmra.mrb[64].mxu0 %vm1349_vm4, %v1342_v40 }
 0x23d   :  { %1895 = vmatpush3.bf16.msra.mxu0 %v1412_v42  ;;  %1896 = vmatprep.mubr.msk.bf16.mxu0 %vm827_vm3, %v783_v36 }
 0x248   :  { %1897 = vmatmul.mubr.msk.bf16.vlgmr.msra.gmra.mrb[64].mxu0 %vm827_vm3, %v784_v6 }
 0x31b   :  { %v1898_v12 = vpop.f32.mrb[64].mxu0 }
 0x31c   :  { %v1472_v43 = vadd.f32 %v1898_v12, %v1674_v11  ;;  %v1448_v44 = vpop.f32.mrb[65].mxu0 }
 0x31d   :  { %v1470_v45 = vadd.f32 %v1674_v11, %v1448_v44  ;;  %v1899_v46 = vpop.f32.mrb[66].mxu0 }
 0x31e   :  { %v1473_v47 = vadd.f32 %v1899_v46, %v1674_v11  ;;  %v1451_v48 = vpop.f32.mrb[67].mxu0  ;;  %v1476_v0 = vmax.f32 %v1472_v43, 0.0 }
 0x31f   :  { %v1471_v49 = vadd.f32 %v1674_v11, %v1451_v48  ;;  %v1474_v36 = vmax.f32 %v1470_v45, 0.0 }
 0x320   :  { %v1477_v4 = vmax.f32 %v1473_v47, 0.0 }
 0x321   :  { %v1475_v50 = vmax.f32 %v1471_v49, 0.0 }
 0x322   :  { %v1484_v51 = vpack.c.bf16 %v1477_v4, %v1476_v0 }
 0x323   :  { %v1483_v62 = vpack.c.bf16 %v1475_v50, %v1474_v36 }
 0x325   :  { %1904 = vmatprep.mubr.msk.bf16.mxu1 %vm1503_vm5, %v1483_v62 }
 0x326   :  { %1905 = vmatmul.mubr.msk.bf16.vlgmr.msra.gmra.mrb[64].mxu1 %vm1503_vm5, %v1484_v51 }
 0x3f9   :  { %v1906_v6 = vpop.f32.mrb[64].mxu1 }
 0x3fa   :  { %v1553_v52 = vadd.f32 %v1906_v6, %v1675_v2  ;;  %v1544_v53 = vpop.f32.mrb[65].mxu1 }
 0x3fb   :  { %v1545_v54 = vadd.f32 %v1675_v2, %v1544_v53  ;;  %v1907_v55 = vpop.f32.mrb[66].mxu1 }
 0x3fc   :  { %v1561_v56 = vmax.f32 %v1553_v52, 0.0  ;;  %v1556_v57 = vadd.f32 %v1907_v55, %v1675_v2  ;;  %v1547_v58 = vpop.f32.mrb[67].mxu1 }
 0x3fd   :  { %v1559_v59 = vmax.f32 %v1545_v54, 0.0  ;;  %v1548_v60 = vadd.f32 %v1675_v2, %v1547_v58 }
 0x3fe   :  { %1565 = vst.msk [vmem:[%s2383_s10 + $0x10] sm:$0xff] %vm1349_vm4, %v1561_v56  ;;  %v1562_v61 = vmax.f32 %v1556_v57, 0.0 }
 0x3ff   :  { %1563 = vst.msk [vmem:[%s2383_s10] sm:$0xff] %vm1349_vm4, %v1559_v59  ;;  %v1560_v63 = vmax.f32 %v1548_v60, 0.0 }
 0x400   :  { %1566 = vst.msk [vmem:[%s2383_s10 + $0x18] sm:$0xff] %vm1349_vm4, %v1562_v61 }
 0x401   :  { %1564 = vst.msk [vmem:[%s2383_s10 + $0x8] sm:$0xff] %vm1349_vm4, %v1560_v63 }

</bundles_post_ra>
